<compile_context>
chip_gen: v7x
topology: tpu7x:2x2x1
jax: 0.10.0
libtpu: 0.0.40
codegen_flags: <defaults>
</compile_context>

<pallas_src>
import functools
import math

import jax
import jax.numpy as jnp
from jax.experimental import pallas as pl
from jax.experimental.pallas import tpu as pltpu


def _round_up(x, m):
    return ((x + m - 1) // m) * m


# ----------------------------------------------------------------------------
# Fused Prenet kernel: (linear(no-bias) -> relu -> dropout(0.5)) x num_layers
# ----------------------------------------------------------------------------
def _prenet_kernel(x_ref, *rest, num_layers, use_masks):
    # x_ref : (RT, Din_p) bf16 row tile
    # rest  : num_layers weight refs (Din_p_i, Dout_p_i) bf16,
    #         [num_layers mask refs (RT, Dout_p_i) bf16 with values {0, 2}],
    #         then o_ref.
    w_refs = rest[:num_layers]
    if use_masks:
        m_refs = rest[num_layers:2 * num_layers]
        o_ref = rest[2 * num_layers]
    else:
        m_refs = [None] * num_layers
        o_ref = rest[num_layers]

    h = x_ref[...]                                        # bf16 (RT, Din_p)
    for i in range(num_layers):                           # static unroll
        y = jnp.dot(h, w_refs[i][...],
                    preferred_element_type=jnp.float32)   # MXU, f32 accum
        y = jnp.maximum(y, 0.0)                           # ReLU (f32, VPU)
        if use_masks:
            # Mask is pre-scaled to {0, 2}: inverted dropout, p = 0.5.
            y = y * m_refs[i][...].astype(jnp.float32)
        h = y.astype(jnp.bfloat16) if i < num_layers - 1 else y
    o_ref[...] = h.astype(o_ref.dtype)


# ----------------------------------------------------------------------------
# Wrapper: pad to lane/sublane-aligned shapes, one fused pallas_call
# ----------------------------------------------------------------------------
def prenet_forward(x, weights, dropout_masks=None, *, row_tile=512):
    """Fused Prenet forward.

    x             : (..., in_dim) f32
    weights       : list of (in_i, out_i) arrays (layer computes x @ W)
    dropout_masks : list of 0/1 arrays of shape (..., out_i), or None to
                    disable dropout (used only for numerics checks).
    """
    *lead, in_dim = x.shape
    num_layers = len(weights)
    out_dim = weights[-1].shape[1]
    use_masks = dropout_masks is not None

    rows = int(math.prod(lead)) if lead else 1
    x2 = x.reshape(rows, in_dim)

    # Lane-dense channel padding (multiples of 128) at every layer boundary.
    dims = [in_dim] + [w.shape[1] for w in weights]
    dims_p = [_round_up(d, 128) for d in dims]

    # Sublane-aligned row tiling; a single tile when the problem is tiny.
    rt = min(row_tile, _round_up(rows, 8))
    rows_p = _round_up(rows, rt)

    x_p = jnp.zeros((rows_p, dims_p[0]), jnp.bfloat16)
    x_p = x_p.at[:rows, :in_dim].set(x2.astype(jnp.bfloat16))

    w_p = []
    for i, w in enumerate(weights):
        wp = jnp.zeros((dims_p[i], dims_p[i + 1]), jnp.bfloat16)
        wp = wp.at[:w.shape[0], :w.shape[1]].set(w.astype(jnp.bfloat16))
        w_p.append(wp)

    m_p = []
    if use_masks:
        for i, m in enumerate(dropout_masks):
            d_out = weights[i].shape[1]
            m2 = m.reshape(rows, d_out).astype(jnp.bfloat16) * 2.0  # {0, 2}
            mp = jnp.zeros((rows_p, dims_p[i + 1]), jnp.bfloat16)
            mp = mp.at[:rows, :d_out].set(m2)
            m_p.append(mp)

    kernel = functools.partial(_prenet_kernel, num_layers=num_layers,
                               use_masks=use_masks)

    in_specs = [pl.BlockSpec((rt, dims_p[0]), lambda r: (r, 0))]
    for i in range(num_layers):
        in_specs.append(
            pl.BlockSpec((dims_p[i], dims_p[i + 1]), lambda r: (0, 0)))
    if use_masks:
        for i in range(num_layers):
            in_specs.append(
                pl.BlockSpec((rt, dims_p[i + 1]), lambda r: (r, 0)))
    out_specs = pl.BlockSpec((rt, dims_p[-1]), lambda r: (r, 0))

    y_p = pl.pallas_call(
        kernel,
        out_shape=jax.ShapeDtypeStruct((rows_p, dims_p[-1]), jnp.float32),
        grid=(rows_p // rt,),
        in_specs=in_specs,
        out_specs=out_specs,
        compiler_params=pltpu.CompilerParams(
            dimension_semantics=("parallel",)),
    )(x_p, *w_p, *m_p)

    y = y_p[:rows, :out_dim]
    return y.reshape(*lead, out_dim)


# ----------------------------------------------------------------------------
# Parameter construction (mirrors LinearNorm: xavier_uniform, bias=False)
# ----------------------------------------------------------------------------
def make_prenet_params(key, in_dim, sizes):
    in_sizes = [in_dim] + sizes[:-1]
    weights = []
    for in_size, out_size in zip(in_sizes, sizes):
        key, wk = jax.random.split(key)
        # torch.nn.init.xavier_uniform_ on (out, in), gain('linear') = 1.0
        a = math.sqrt(6.0 / (in_size + out_size))
        w = jax.random.uniform(wk, (out_size, in_size), jnp.float32, -a, a)
        weights.append(w.T)                # (in, out) so the kernel does x @ W
    return weights


if __name__ == "__main__":
    # Small shapes consistent with the module.
    B, T, in_dim = 2, 8, 32
    sizes = [32, 32]

    key = jax.random.PRNGKey(0)
    key, pkey, xkey = jax.random.split(key, 3)
    weights = make_prenet_params(pkey, in_dim, sizes)
    x = jax.random.normal(xkey, (B, T, in_dim), jnp.float32)

    # 1) Numerics sanity check with dropout disabled vs pure-JAX reference.
    det = jax.jit(lambda x: prenet_forward(x, weights, None))(x)
    ref = x
    for w in weights:
        ref = jnp.maximum(ref @ w, 0.0)
    assert det.shape == ref.shape, (det.shape, ref.shape)
    assert bool(jnp.allclose(det, ref, atol=5e-2, rtol=5e-2)), \
        "mismatch vs reference (dropout off)"

    # 2) Module-faithful forward: dropout(p=0.5, training=True) always active.
    masks = []
    mkey = key
    for w in weights:
        mkey, mk = jax.random.split(mkey)
        masks.append(jax.random.bernoulli(
            mk, 0.5, (B, T, w.shape[1])).astype(jnp.float32))

    out = jax.jit(lambda x, ms: prenet_forward(x, weights, ms))(x, masks)
    jax.block_until_ready(out)
    assert out.shape == (B, T, sizes[-1]), out.shape
    assert bool(jnp.all(jnp.isfinite(out)))
    assert bool(jnp.all(out >= 0.0))          # relu -> dropout keeps sign

    # Cross-check against a pure-JAX reference using the same masks.
    ref_drop = x
    for w, m in zip(weights, masks):
        ref_drop = jnp.maximum(ref_drop @ w, 0.0) * m * 2.0
    assert bool(jnp.allclose(out, ref_drop, atol=5e-2, rtol=5e-2)), \
        "mismatch vs reference (dropout on)"

    print("KERNEL_OK")
</pallas_src>

<mosaic_0001>
module attributes {stable_mosaic.version = 11 : i64} {
  func.func @_prenet_kernel(%arg0: i32, %arg1: memref<16x128xbf16, #tpu.memory_space<vmem>>, %arg2: memref<128x128xbf16, #tpu.memory_space<vmem>>, %arg3: memref<128x128xbf16, #tpu.memory_space<vmem>>, %arg4: memref<16x128xf32, #tpu.memory_space<vmem>>) attributes {dimension_semantics = [#tpu.dimension_semantics<parallel>], iteration_bounds = array<i64: 1>, scalar_prefetch = 0 : i64, scratch_operands = 0 : i64, tpu.core_type = #tpu.core_type<tc>, window_params = [{transform_indices = @transform_0, window_bounds = array<i64: 16, 128>}, {pipeline_mode = #tpu.pipeline_mode<synchronous>, transform_indices = @transform_1, window_bounds = array<i64: 128, 128>}, {pipeline_mode = #tpu.pipeline_mode<synchronous>, transform_indices = @transform_2, window_bounds = array<i64: 128, 128>}, {transform_indices = @transform_3, window_bounds = array<i64: 16, 128>}]} {
    %c0 = arith.constant 0 : index
    %c0_0 = arith.constant 0 : index
    %0 = vector.load %arg1[%c0, %c0_0] : memref<16x128xbf16, #tpu.memory_space<vmem>>, vector<16x128xbf16>
    %c0_1 = arith.constant 0 : index
    %c0_2 = arith.constant 0 : index
    %1 = vector.load %arg2[%c0_1, %c0_2] : memref<128x128xbf16, #tpu.memory_space<vmem>>, vector<128x128xbf16>
    %cst = arith.constant dense<0.000000e+00> : vector<16x128xf32>
    %2 = tpu.matmul %0, %1, %cst {dimension_numbers = #tpu.dot_dimension_numbers<[1], [0], [0], [1], [0, 0, 1, 1], [], []>} : vector<16x128xbf16>, vector<128x128xbf16>, vector<16x128xf32> -> vector<16x128xf32>
    %cst_3 = arith.constant 0.000000e+00 : f32
    %3 = vector.broadcast %cst_3 : f32 to vector<16x128xf32>
    %4 = arith.maximumf %2, %3 : vector<16x128xf32>
    %5 = arith.truncf %4 : vector<16x128xf32> to vector<16x128xbf16>
    %c0_4 = arith.constant 0 : index
    %c0_5 = arith.constant 0 : index
    %6 = vector.load %arg3[%c0_4, %c0_5] : memref<128x128xbf16, #tpu.memory_space<vmem>>, vector<128x128xbf16>
    %cst_6 = arith.constant dense<0.000000e+00> : vector<16x128xf32>
    %7 = tpu.matmul %5, %6, %cst_6 {dimension_numbers = #tpu.dot_dimension_numbers<[1], [0], [0], [1], [0, 0, 1, 1], [], []>} : vector<16x128xbf16>, vector<128x128xbf16>, vector<16x128xf32> -> vector<16x128xf32>
    %cst_7 = arith.constant 0.000000e+00 : f32
    %8 = vector.broadcast %cst_7 : f32 to vector<16x128xf32>
    %9 = arith.maximumf %7, %8 : vector<16x128xf32>
    %c0_8 = arith.constant 0 : index
    %c0_9 = arith.constant 0 : index
    %10 = vector.load %arg4[%c0_8, %c0_9] : memref<16x128xf32, #tpu.memory_space<vmem>>, vector<16x128xf32>
    tpu.vector_store %arg4[%c0_8, %c0_9], %9 {strides = array<i32>} : memref<16x128xf32, #tpu.memory_space<vmem>>, vector<16x128xf32>,
    return
  }
  func.func @transform_0(%arg0: i32) -> (i32, i32) {
    %c0_i32 = arith.constant 0 : i32
    %c0_i32_0 = arith.constant 0 : i32
    return %arg0, %c0_i32 : i32, i32
  }
  func.func @transform_1(%arg0: i32) -> (i32, i32) {
    %c0_i32 = arith.constant 0 : i32
    %c0_i32_0 = arith.constant 0 : i32
    %c0_i32_1 = arith.constant 0 : i32
    return %c0_i32, %c0_i32_0 : i32, i32
  }
  func.func @transform_2(%arg0: i32) -> (i32, i32) {
    %c0_i32 = arith.constant 0 : i32
    %c0_i32_0 = arith.constant 0 : i32
    %c0_i32_1 = arith.constant 0 : i32
    return %c0_i32, %c0_i32_0 : i32, i32
  }
  func.func @transform_3(%arg0: i32) -> (i32, i32) {
    %c0_i32 = arith.constant 0 : i32
    %c0_i32_0 = arith.constant 0 : i32
    return %arg0, %c0_i32 : i32, i32
  }
}

</mosaic_0001>

<bundles_post_ra>
// kernel: _lambda_.1
= control target key start
LH: loop header
LB: loop body
LE: loop exit
PB: predicated region body
PF: predicated region fallthrough
CT: control target
= control target key end

     0   :  { %8 = vsyncpa [#allocation3], 0  ;;  %s380_s12 = smov [#allocation2]   ;;  %s450_s0 = inlined_call_operand.vmem [shape: bf16[16,128], index: 0, kind: input, shape index: {}]   ;;  %s451_s1 = inlined_call_operand.hbm [shape: bf16[128,128], index: 1, kind: input, shape index: {}]   ;;  %s452_s2 = inlined_call_operand.vmem [shape: bf16[128,128], index: 2, kind: input, shape index: {}]   ;;  %s453_s3 = inlined_call_operand.vmem [shape: f32[16,128], index: 3, kind: output, shape index: {}]  }
   0x1   :  { %s16_s13 = sshll.u32 %s380_s12, 4  ;;  %s356_s16 = scalar_lea.hbm %s451_s1, 1024  ;;  %s17_s13 = int_to_ptr.vmem [resolvable:$true] %s16_s13 }
   0x2   :  { %p357_p0 = scmp.ne.s32.totalorder %s451_s1, %s356_s16  ;;  %p360_p1 = scmp.lt.u32.totalorder %s356_s16, %s451_s1 }
   0x4   :  { %p362_p2 = pnand %p360_p1, %p357_p0 }
   0x6   :  { %365 = shalt.err (!%p362_p2)
}
   0x7   :  { %s366_s21 = scalar_lea.vmem %s17_s13, 1024  ;;  %p371_p4 = scmp.lt.s32.totalorder %s17_s13, %s17_s13 }
   0x8   :  { %p367_p3 = scmp.ne.s32.totalorder %s17_s13, %s366_s21  ;;  %p372_p5 = scmp.lt.s32.totalorder %s366_s21, %s366_s21 }
   0xa   :  { %p373_p6 = por %p372_p5, %p371_p4 }
   0xc   :  { %p374_p7 = pnand %p373_p6, %p367_p3 }
   0xe   :  { %377 = shalt.err (!%p374_p7)
}
   0xf   :  { %s381_s22 = smov 64   ;;  %s382_s23 = smov 4  }
  0x10   :  { %22 = dma.hbm_to_vmem [thread:$0]  %s451_s1, 1024, %s17_s13, [#allocation3], %s381_s22, %s381_s22, %s382_s23  }
  0x11   :  { %378 = dma.done.wait [#allocation3], 1024  }
  0x12   :  { %379 = vsyncadd [#allocation3], 4294966272  ;;  %v383_v0 = vmov 0.0   ;;  %vm384_vm0 = vmmov 0   ;;  %v339_v1 = vld [vmem:[#allocation2] sm:$0xff]   ;;  %v340_v2 = vld [vmem:[#allocation2 + $0x8] sm:$0xff]  }
  0x13   :  { %294 = vmatprep.subr.bf16.mxu0 %v383_v0  ;;  %310 = vmatprep.mubr.msk.bf16.mxu0 %vm384_vm0, %v383_v0  ;;  %v341_v3 = vld [vmem:[#allocation2 + $0x10] sm:$0xff]   ;;  %v348_v4 = vld [vmem:[%s452_s2] sm:$0xff]   ;;  %v342_v5 = vld [vmem:[#allocation2 + $0x18] sm:$0xff]  }
  0x14   :  { %314 = vmatprep.subr.bf16.mxu1 %v383_v0  ;;  %330 = vmatprep.mubr.msk.bf16.mxu1 %vm384_vm0, %v383_v0  ;;  %v349_v6 = vld [vmem:[%s452_s2 + $0x8] sm:$0xff]   ;;  %v343_v7 = vld [vmem:[#allocation2 + $0x20] sm:$0xff]   ;;  %v350_v8 = vld [vmem:[%s452_s2 + $0x10] sm:$0xff]  }
  0x15   :  { %295 = vmatpush3.bf16.msra.mxu0 %v339_v1  ;;  %315 = vmatpush3.bf16.msra.mxu1 %v348_v4  ;;  %v344_v9 = vld [vmem:[#allocation2 + $0x28] sm:$0xff]   ;;  %v351_v10 = vld [vmem:[%s452_s2 + $0x18] sm:$0xff]   ;;  %v345_v11 = vld [vmem:[#allocation2 + $0x30] sm:$0xff]  }
  0x16   :  { %296 = vmatprep.subr.bf16.mxu0 %v383_v0  ;;  %316 = vmatprep.subr.bf16.mxu1 %v383_v0  ;;  %v352_v12 = vld [vmem:[%s452_s2 + $0x20] sm:$0xff]   ;;  %v346_v13 = vld [vmem:[#allocation2 + $0x38] sm:$0xff]   ;;  %v353_v14 = vld [vmem:[%s452_s2 + $0x28] sm:$0xff]  }
  0x17   :  { %v347_v15 = vld [vmem:[%s450_s0] sm:$0xff]   ;;  %v354_v16 = vld [vmem:[%s452_s2 + $0x30] sm:$0xff]   ;;  %v355_v17 = vld [vmem:[%s452_s2 + $0x38] sm:$0xff]  }
  0x19   :  { %297 = vmatpush3.bf16.msra.mxu0 %v340_v2  ;;  %317 = vmatpush3.bf16.msra.mxu1 %v349_v6 }
  0x1a   :  { %298 = vmatprep.subr.bf16.mxu0 %v383_v0  ;;  %318 = vmatprep.subr.bf16.mxu1 %v383_v0 }
  0x1d   :  { %299 = vmatpush3.bf16.msra.mxu0 %v341_v3  ;;  %319 = vmatpush3.bf16.msra.mxu1 %v350_v8 }
  0x1e   :  { %300 = vmatprep.subr.bf16.mxu0 %v383_v0  ;;  %320 = vmatprep.subr.bf16.mxu1 %v383_v0 }
  0x21   :  { %301 = vmatpush3.bf16.msra.mxu0 %v342_v5  ;;  %321 = vmatpush3.bf16.msra.mxu1 %v351_v10 }
  0x22   :  { %302 = vmatprep.subr.bf16.mxu0 %v383_v0  ;;  %322 = vmatprep.subr.bf16.mxu1 %v383_v0 }
  0x25   :  { %303 = vmatpush3.bf16.msra.mxu0 %v343_v7  ;;  %323 = vmatpush3.bf16.msra.mxu1 %v352_v12 }
  0x26   :  { %304 = vmatprep.subr.bf16.mxu0 %v383_v0  ;;  %324 = vmatprep.subr.bf16.mxu1 %v383_v0 }
  0x29   :  { %305 = vmatpush3.bf16.msra.mxu0 %v344_v9  ;;  %325 = vmatpush3.bf16.msra.mxu1 %v353_v14 }
  0x2a   :  { %306 = vmatprep.subr.bf16.mxu0 %v383_v0  ;;  %326 = vmatprep.subr.bf16.mxu1 %v383_v0 }
  0x2d   :  { %307 = vmatpush3.bf16.msra.mxu0 %v345_v11  ;;  %327 = vmatpush3.bf16.msra.mxu1 %v354_v16 }
  0x2e   :  { %308 = vmatprep.subr.bf16.mxu0 %v383_v0  ;;  %328 = vmatprep.subr.bf16.mxu1 %v383_v0 }
  0x31   :  { %309 = vmatpush3.bf16.msra.mxu0 %v346_v13  ;;  %329 = vmatpush3.bf16.msra.mxu1 %v355_v17 }
  0x34   :  { %311 = vmatmul.mubr.bf16.vlgmr.msra.gmra.mrb[0].mxu0 %v347_v15 }
 0x107   :  { %v135_v18 = vpop.f32.mrb[0].mxu0 }
 0x108   :  { %v312_v19 = vpop.f32.mrb[1].mxu0  ;;  %v142_v21 = vmax.f32 %v135_v18, 0.0 }
 0x109   :  { %v138_v20 = vpop.f32.mrb[2].mxu0 }
 0x10a   :  { %v143_v22 = vmax.f32 %v138_v20, 0.0  ;;  %v313_v23 = vpop.f32.mrb[3].mxu0 }
 0x10c   :  { %v144_v24 = vpack.c.bf16 %v143_v22, %v142_v21 }
 0x10e   :  { %331 = vmatmul.mubr.bf16.vlgmr.msra.gmra.mrb[0].mxu1 %v144_v24 }
 0x1e1   :  { %v243_v25 = vpop.f32.mrb[0].mxu1 }
 0x1e2   :  { %v250_v26 = vmax.f32 %v243_v25, 0.0  ;;  %v332_v27 = vpop.f32.mrb[1].mxu1 }
 0x1e3   :  { %v246_v28 = vpop.f32.mrb[2].mxu1 }
 0x1e4   :  { %252 = vst [vmem:[%s453_s3] sm:$0xff] %v250_v26  ;;  %v251_v29 = vmax.f32 %v246_v28, 0.0  ;;  %v333_v30 = vpop.f32.mrb[3].mxu1 }
 0x1e6   :  { %253 = vst [vmem:[%s453_s3 + $0x8] sm:$0xff] %v251_v29 }
 0x1e7   :  { %258 = vsyncpa [#allocation3], 1 }

</bundles_post_ra>
